<compile_context>
chip_gen: v5e
topology: v5e:2x2
jax: 0.10.0
libtpu: 0.0.40
codegen_flags: <defaults>
</compile_context>

<pallas_src>
import jax
import jax.numpy as jnp
from jax.experimental import pallas as pl
from jax.experimental.pallas import tpu as pltpu

EPS = 0.01
DEFAULT_TILE_B = 8192   # rows per grid step (multiple of 8); 8192*4*4B = 128 KiB / tile


def _make_flow_kernel(mode: str, num_layers: int, eps: float, dim: int):
    """Fused reluNet + coupling kernel for static (mode, num_layers, dim)."""

    def kernel(x_ref, w0_ref, b0_ref, wh_ref, bh_ref, wout_ref, bout_ref, o_ref):
        x = x_ref[...].astype(jnp.float32)            # (TB, D)
        x1 = x[:, 0:1]                                # (TB, 1)

        # --- g = reluNet(x[:, 1:]) ------------------------------------------
        # First layer: K = dim-1 is tiny (e.g. 3); an MXU matmul would be
        # almost entirely padding, so do an unrolled VPU broadcast-FMA.
        h = x[:, 1:2] * w0_ref[0:1, :] + b0_ref[...]  # (TB, H)
        for k in range(1, dim - 1):                   # static unroll over features
            h = h + x[:, k + 1:k + 2] * w0_ref[k:k + 1, :]
        h = jnp.maximum(h, 0.0)

        # Hidden layers: H x H matmuls on the MXU, f32 accumulation.
        for l in range(num_layers):                   # static unroll over layers
            h = jnp.dot(h, wh_ref[l], preferred_element_type=jnp.float32) + bh_ref[l]
            h = jnp.maximum(h, 0.0)

        # Output layer has N = 1: lane reduction (VPU/XLU) instead of a
        # 1-useful-lane MXU matmul.
        g = jnp.sum(h * wout_ref[...], axis=-1, keepdims=True) + bout_ref[...]
        g2 = g * g                                    # (TB, 1)

        # --- coupling ---------------------------------------------------------
        if mode in ("LR", "LRflow"):                  # bER
            y1 = x1 / (eps + g2)
        elif mode in ("LRexp", "LRexpFlow"):          # bERexp
            y1 = x1 * jnp.exp(-(eps + g2))
        else:                                         # 'fixed' -> identity flow
            y1 = x1

        # out = concat([y1, x[:, 1:]], axis=1): pass x through, replace column 0.
        o_ref[...] = x
        o_ref[:, 0:1] = y1

    return kernel


def init_flow_params(key, dim, hidden_dim, num_layers, dtype=jnp.float32):
    """Deterministic synthetic init of reluNet parameters (build_relu shapes).

    reluNet = Linear(dim-1, hidden) -> ReLU
              -> [Linear(hidden, hidden) -> ReLU] * num_layers
              -> Linear(hidden, 1)
    Weights are stored as (in, out) so the kernel/reference do x @ W + b.
    """
    ks = jax.random.split(key, 2 * (num_layers + 2))
    s = 0.1
    w0 = s * jax.random.normal(ks[0], (dim - 1, hidden_dim), dtype)      # (in, out)
    b0 = s * jax.random.normal(ks[1], (1, hidden_dim), dtype)
    nl = max(num_layers, 1)
    wh = jnp.zeros((nl, hidden_dim, hidden_dim), dtype)
    bh = jnp.zeros((nl, 1, hidden_dim), dtype)
    for l in range(num_layers):
        wh = wh.at[l].set(s * jax.random.normal(ks[2 + 2 * l], (hidden_dim, hidden_dim), dtype))
        bh = bh.at[l].set(s * jax.random.normal(ks[3 + 2 * l], (1, hidden_dim), dtype))
    wout_t = s * jax.random.normal(ks[2 + 2 * num_layers], (1, hidden_dim), dtype)  # (1, H)
    bout = s * jax.random.normal(ks[3 + 2 * num_layers], (1, 1), dtype)
    return dict(w0=w0, b0=b0, wh=wh, bh=bh, wout_t=wout_t, bout=bout)


def flow_model_forward(x, params, mode, num_layers, tile_b=DEFAULT_TILE_B):
    """flowModel.forward via a batch-tiled, pipelined Pallas kernel."""
    B, D = x.shape
    tb = B if B <= tile_b else tile_b        # small B -> single full-array block
    grid = (pl.cdiv(B, tb),)
    kernel = _make_flow_kernel(mode, num_layers, EPS, D)

    def _resident(arr):
        # Full-array block with a constant index_map: the weight stays
        # VMEM-resident across all grid steps.
        rank = arr.ndim
        return pl.BlockSpec(arr.shape, lambda i, _r=rank: (0,) * _r)

    row_spec = pl.BlockSpec((tb, D), lambda i: (i, 0))

    return pl.pallas_call(
        kernel,
        out_shape=jax.ShapeDtypeStruct((B, D), jnp.float32),
        grid=grid,
        in_specs=[row_spec,
                  _resident(params["w0"]),
                  _resident(params["b0"]),
                  _resident(params["wh"]),
                  _resident(params["bh"]),
                  _resident(params["wout_t"]),
                  _resident(params["bout"])],
        out_specs=row_spec,
        compiler_params=pltpu.CompilerParams(
            dimension_semantics=("parallel",)),
    )(x.astype(jnp.float32), params["w0"], params["b0"], params["wh"],
      params["bh"], params["wout_t"], params["bout"])


def flow_model_reference(x, params, mode, num_layers):
    """Pure-JAX reference mirroring the PyTorch forward, for verification."""
    x1, x2 = x[:, :1], x[:, 1:]
    h = jnp.maximum(x2 @ params["w0"] + params["b0"], 0.0)
    for l in range(num_layers):
        h = jnp.maximum(h @ params["wh"][l] + params["bh"][l], 0.0)
    g = h @ params["wout_t"].T + params["bout"]
    g2 = g * g
    if mode in ("LR", "LRflow"):
        y1 = x1 / (EPS + g2)
    elif mode in ("LRexp", "LRexpFlow"):
        y1 = x1 * jnp.exp(-(EPS + g2))
    else:
        y1 = x1
    return jnp.concatenate([y1, x2], axis=1)


if __name__ == "__main__":
    # flowModel(dim=4, hidden_dim=32, num_layers=2)
    dim, hidden_dim, num_layers = 4, 32, 2

    key = jax.random.PRNGKey(0)
    k_params, k_x_small, k_x_big = jax.random.split(key, 3)
    params = init_flow_params(k_params, dim, hidden_dim, num_layers)

    # Small batch (single full-array block), all three coupling branches.
    x_small = jax.random.normal(k_x_small, (8, dim), jnp.float32)
    for mode in ("LR", "LRexp", "fixed"):
        out = jax.block_until_ready(flow_model_forward(x_small, params, mode, num_layers))
        ref = flow_model_reference(x_small, params, mode, num_layers)
        assert out.shape == x_small.shape
        assert jnp.allclose(out, ref, atol=1e-5, rtol=1e-5), f"mismatch ({mode}, small)"

    # Larger batch exercising the multi-step pipelined grid (4096 rows / 512-row tiles).
    x_big = jax.random.normal(k_x_big, (4096, dim), jnp.float32)
    out = jax.block_until_ready(
        flow_model_forward(x_big, params, "LR", num_layers, tile_b=512))
    ref = flow_model_reference(x_big, params, "LR", num_layers)
    assert jnp.allclose(out, ref, atol=1e-5, rtol=1e-5), "mismatch (LR, big)"

    print("KERNEL_OK")
</pallas_src>

<mosaic_0001>
module attributes {stable_mosaic.version = 11 : i64} {
  func.func @kernel(%arg0: i32, %arg1: memref<8x4xf32, #tpu.memory_space<vmem>>, %arg2: memref<3x32xf32, #tpu.memory_space<vmem>>, %arg3: memref<1x32xf32, #tpu.memory_space<vmem>>, %arg4: memref<2x32x32xf32, #tpu.memory_space<vmem>>, %arg5: memref<2x1x32xf32, #tpu.memory_space<vmem>>, %arg6: memref<1x32xf32, #tpu.memory_space<vmem>>, %arg7: memref<1x1xf32, #tpu.memory_space<vmem>>, %arg8: memref<8x4xf32, #tpu.memory_space<vmem>>) attributes {dimension_semantics = [#tpu.dimension_semantics<parallel>], iteration_bounds = array<i64: 1>, scalar_prefetch = 0 : i64, scratch_operands = 0 : i64, tpu.core_type = #tpu.core_type<tc>, window_params = [{transform_indices = @transform_0, window_bounds = array<i64: 8, 4>}, {pipeline_mode = #tpu.pipeline_mode<synchronous>, transform_indices = @transform_1, window_bounds = array<i64: 3, 32>}, {pipeline_mode = #tpu.pipeline_mode<synchronous>, transform_indices = @transform_2, window_bounds = array<i64: 1, 32>}, {pipeline_mode = #tpu.pipeline_mode<synchronous>, transform_indices = @transform_3, window_bounds = array<i64: 2, 32, 32>}, {pipeline_mode = #tpu.pipeline_mode<synchronous>, transform_indices = @transform_4, window_bounds = array<i64: 2, 1, 32>}, {pipeline_mode = #tpu.pipeline_mode<synchronous>, transform_indices = @transform_5, window_bounds = array<i64: 1, 32>}, {pipeline_mode = #tpu.pipeline_mode<synchronous>, transform_indices = @transform_6, window_bounds = array<i64: 1, 1>}, {transform_indices = @transform_7, window_bounds = array<i64: 8, 4>}]} {
    %c0 = arith.constant 0 : index
    %c0_0 = arith.constant 0 : index
    %0 = vector.load %arg1[%c0, %c0_0] : memref<8x4xf32, #tpu.memory_space<vmem>>, vector<8x4xf32>
    %1 = vector.extract_strided_slice %0 {offsets = [0, 0], sizes = [8, 1], strides = [1, 1]} : vector<8x4xf32> to vector<8x1xf32>
    %2 = vector.extract_strided_slice %0 {offsets = [0, 1], sizes = [8, 1], strides = [1, 1]} : vector<8x4xf32> to vector<8x1xf32>
    %c0_1 = arith.constant 0 : index
    %c0_2 = arith.constant 0 : index
    %3 = vector.load %arg2[%c0_1, %c0_2] : memref<3x32xf32, #tpu.memory_space<vmem>>, vector<1x32xf32>
    %4 = vector.broadcast %2 : vector<8x1xf32> to vector<8x32xf32>
    %5 = vector.broadcast %3 : vector<1x32xf32> to vector<8x32xf32>
    %6 = arith.mulf %4, %5 : vector<8x32xf32>
    %c0_3 = arith.constant 0 : index
    %c0_4 = arith.constant 0 : index
    %7 = vector.load %arg3[%c0_3, %c0_4] : memref<1x32xf32, #tpu.memory_space<vmem>>, vector<1x32xf32>
    %8 = vector.broadcast %7 : vector<1x32xf32> to vector<8x32xf32>
    %9 = arith.addf %6, %8 : vector<8x32xf32>
    %10 = vector.extract_strided_slice %0 {offsets = [0, 2], sizes = [8, 1], strides = [1, 1]} : vector<8x4xf32> to vector<8x1xf32>
    %c1 = arith.constant 1 : index
    %c0_5 = arith.constant 0 : index
    %11 = vector.load %arg2[%c1, %c0_5] : memref<3x32xf32, #tpu.memory_space<vmem>>, vector<1x32xf32>
    %12 = vector.broadcast %10 : vector<8x1xf32> to vector<8x32xf32>
    %13 = vector.broadcast %11 : vector<1x32xf32> to vector<8x32xf32>
    %14 = arith.mulf %12, %13 : vector<8x32xf32>
    %15 = arith.addf %9, %14 : vector<8x32xf32>
    %16 = vector.extract_strided_slice %0 {offsets = [0, 3], sizes = [8, 1], strides = [1, 1]} : vector<8x4xf32> to vector<8x1xf32>
    %c2 = arith.constant 2 : index
    %c0_6 = arith.constant 0 : index
    %17 = vector.load %arg2[%c2, %c0_6] : memref<3x32xf32, #tpu.memory_space<vmem>>, vector<1x32xf32>
    %18 = vector.broadcast %16 : vector<8x1xf32> to vector<8x32xf32>
    %19 = vector.broadcast %17 : vector<1x32xf32> to vector<8x32xf32>
    %20 = arith.mulf %18, %19 : vector<8x32xf32>
    %21 = arith.addf %15, %20 : vector<8x32xf32>
    %cst = arith.constant 0.000000e+00 : f32
    %22 = vector.broadcast %cst : f32 to vector<8x32xf32>
    %23 = arith.maximumf %21, %22 : vector<8x32xf32>
    %c0_7 = arith.constant 0 : index
    %c0_8 = arith.constant 0 : index
    %c0_9 = arith.constant 0 : index
    %24 = vector.load %arg4[%c0_7, %c0_8, %c0_9] : memref<2x32x32xf32, #tpu.memory_space<vmem>>, vector<1x32x32xf32>
    %25 = vector.shape_cast %24 : vector<1x32x32xf32> to vector<32x32xf32>
    %cst_10 = arith.constant dense<0.000000e+00> : vector<8x32xf32>
    %26 = tpu.matmul %23, %25, %cst_10 {dimension_numbers = #tpu.dot_dimension_numbers<[1], [0], [0], [1], [0, 0, 1, 1], [], []>} : vector<8x32xf32>, vector<32x32xf32>, vector<8x32xf32> -> vector<8x32xf32>
    %c0_11 = arith.constant 0 : index
    %c0_12 = arith.constant 0 : index
    %c0_13 = arith.constant 0 : index
    %27 = vector.load %arg5[%c0_11, %c0_12, %c0_13] : memref<2x1x32xf32, #tpu.memory_space<vmem>>, vector<1x1x32xf32>
    %28 = vector.shape_cast %27 : vector<1x1x32xf32> to vector<1x32xf32>
    %29 = vector.broadcast %28 : vector<1x32xf32> to vector<8x32xf32>
    %30 = arith.addf %26, %29 : vector<8x32xf32>
    %cst_14 = arith.constant 0.000000e+00 : f32
    %31 = vector.broadcast %cst_14 : f32 to vector<8x32xf32>
    %32 = arith.maximumf %30, %31 : vector<8x32xf32>
    %c1_15 = arith.constant 1 : index
    %c0_16 = arith.constant 0 : index
    %c0_17 = arith.constant 0 : index
    %33 = vector.load %arg4[%c1_15, %c0_16, %c0_17] : memref<2x32x32xf32, #tpu.memory_space<vmem>>, vector<1x32x32xf32>
    %34 = vector.shape_cast %33 : vector<1x32x32xf32> to vector<32x32xf32>
    %cst_18 = arith.constant dense<0.000000e+00> : vector<8x32xf32>
    %35 = tpu.matmul %32, %34, %cst_18 {dimension_numbers = #tpu.dot_dimension_numbers<[1], [0], [0], [1], [0, 0, 1, 1], [], []>} : vector<8x32xf32>, vector<32x32xf32>, vector<8x32xf32> -> vector<8x32xf32>
    %c1_19 = arith.constant 1 : index
    %c0_20 = arith.constant 0 : index
    %c0_21 = arith.constant 0 : index
    %36 = vector.load %arg5[%c1_19, %c0_20, %c0_21] : memref<2x1x32xf32, #tpu.memory_space<vmem>>, vector<1x1x32xf32>
    %37 = vector.shape_cast %36 : vector<1x1x32xf32> to vector<1x32xf32>
    %38 = vector.broadcast %37 : vector<1x32xf32> to vector<8x32xf32>
    %39 = arith.addf %35, %38 : vector<8x32xf32>
    %cst_22 = arith.constant 0.000000e+00 : f32
    %40 = vector.broadcast %cst_22 : f32 to vector<8x32xf32>
    %41 = arith.maximumf %39, %40 : vector<8x32xf32>
    %c0_23 = arith.constant 0 : index
    %c0_24 = arith.constant 0 : index
    %42 = vector.load %arg6[%c0_23, %c0_24] : memref<1x32xf32, #tpu.memory_space<vmem>>, vector<1x32xf32>
    %43 = vector.broadcast %42 : vector<1x32xf32> to vector<8x32xf32>
    %44 = arith.mulf %41, %43 : vector<8x32xf32>
    %cst_25 = arith.constant dense<0.000000e+00> : vector<8xf32>
    %45 = vector.multi_reduction <add>, %44, %cst_25 [1] : vector<8x32xf32> to vector<8xf32>
    %46 = vector.shape_cast %45 : vector<8xf32> to vector<8x1xf32>
    %c0_26 = arith.constant 0 : index
    %c0_27 = arith.constant 0 : index
    %47 = vector.load %arg7[%c0_26, %c0_27] : memref<1x1xf32, #tpu.memory_space<vmem>>, vector<1x1xf32>
    %48 = vector.broadcast %47 : vector<1x1xf32> to vector<8x1xf32>
    %49 = arith.addf %46, %48 : vector<8x1xf32>
    %50 = arith.mulf %49, %49 : vector<8x1xf32>
    %cst_28 = arith.constant 0.00999999977 : f32
    %51 = vector.broadcast %cst_28 : f32 to vector<8x1xf32>
    %52 = arith.addf %51, %50 : vector<8x1xf32>
    %53 = arith.divf %1, %52 : vector<8x1xf32>
    %c0_29 = arith.constant 0 : index
    %c0_30 = arith.constant 0 : index
    %54 = vector.load %arg8[%c0_29, %c0_30] : memref<8x4xf32, #tpu.memory_space<vmem>>, vector<8x4xf32>
    tpu.vector_store %arg8[%c0_29, %c0_30], %0 {strides = array<i32>} : memref<8x4xf32, #tpu.memory_space<vmem>>, vector<8x4xf32>,
    %c0_31 = arith.constant 0 : index
    %c0_32 = arith.constant 0 : index
    %55 = vector.load %arg8[%c0_31, %c0_32] : memref<8x4xf32, #tpu.memory_space<vmem>>, vector<8x1xf32>
    tpu.vector_store %arg8[%c0_31, %c0_32], %53 {strides = array<i32>} : memref<8x4xf32, #tpu.memory_space<vmem>>, vector<8x1xf32>,
    return
  }
  func.func @transform_0(%arg0: i32) -> (i32, i32) {
    %c0_i32 = arith.constant 0 : i32
    %c0_i32_0 = arith.constant 0 : i32
    return %arg0, %c0_i32 : i32, i32
  }
  func.func @transform_1(%arg0: i32) -> (i32, i32) {
    %c0_i32 = arith.constant 0 : i32
    %c0_i32_0 = arith.constant 0 : i32
    %c0_i32_1 = arith.constant 0 : i32
    return %c0_i32, %c0_i32_0 : i32, i32
  }
  func.func @transform_2(%arg0: i32) -> (i32, i32) {
    %c0_i32 = arith.constant 0 : i32
    %c0_i32_0 = arith.constant 0 : i32
    %c0_i32_1 = arith.constant 0 : i32
    return %c0_i32, %c0_i32_0 : i32, i32
  }
  func.func @transform_3(%arg0: i32) -> (i32, i32, i32) {
    %c0_i32 = arith.constant 0 : i32
    %c0_i32_0 = arith.constant 0 : i32
    %c0_i32_1 = arith.constant 0 : i32
    %c0_i32_2 = arith.constant 0 : i32
    return %c0_i32, %c0_i32_0, %c0_i32_1 : i32, i32, i32
  }
  func.func @transform_4(%arg0: i32) -> (i32, i32, i32) {
    %c0_i32 = arith.constant 0 : i32
    %c0_i32_0 = arith.constant 0 : i32
    %c0_i32_1 = arith.constant 0 : i32
    %c0_i32_2 = arith.constant 0 : i32
    return %c0_i32, %c0_i32_0, %c0_i32_1 : i32, i32, i32
  }
  func.func @transform_5(%arg0: i32) -> (i32, i32) {
    %c0_i32 = arith.constant 0 : i32
    %c0_i32_0 = arith.constant 0 : i32
    %c0_i32_1 = arith.constant 0 : i32
    return %c0_i32, %c0_i32_0 : i32, i32
  }
  func.func @transform_6(%arg0: i32) -> (i32, i32) {
    %c0_i32 = arith.constant 0 : i32
    %c0_i32_0 = arith.constant 0 : i32
    %c0_i32_1 = arith.constant 0 : i32
    return %c0_i32, %c0_i32_0 : i32, i32
  }
  func.func @transform_7(%arg0: i32) -> (i32, i32) {
    %c0_i32 = arith.constant 0 : i32
    %c0_i32_0 = arith.constant 0 : i32
    return %arg0, %c0_i32 : i32, i32
  }
}

</mosaic_0001>

<bundles_post_ra>
// kernel: tpu_custom_call.1
= control target key start
LH: loop header
LB: loop body
LE: loop exit
PB: predicated region body
PF: predicated region fallthrough
CT: control target
= control target key end

     0   :  { %s322_s0 = inlined_call_operand.vmem [shape: f32[8,4], index: 0, kind: input, shape index: {}]   ;;  %s323_s1 = inlined_call_operand.vmem [shape: f32[3,32], index: 1, kind: input, shape index: {}]   ;;  %s324_s2 = inlined_call_operand.vmem [shape: f32[1,32], index: 2, kind: input, shape index: {}]   ;;  %s325_s3 = inlined_call_operand.hbm [shape: f32[2,32,32], index: 3, kind: input, shape index: {}]   ;;  %s326_s4 = inlined_call_operand.vmem [shape: f32[2,1,32], index: 4, kind: input, shape index: {}]   ;;  %s327_s5 = inlined_call_operand.vmem [shape: f32[1,32], index: 5, kind: input, shape index: {}]   ;;  %s328_s6 = inlined_call_operand.<no memory space> [shape: f32[1,1], index: 6, kind: input, shape index: {}]   ;;  %s329_s7 = inlined_call_operand.vmem [shape: f32[8,4], index: 7, kind: output, shape index: {}]  }
   0x1   :  { %v12_v0 = vstv %s328_s6 }
   0x2   :  { %13 = vst [vmem:[#allocation2] sm:$0x1] %v12_v0 }
   0x3   :  { %14 = vsyncpa [#allocation4], 0  ;;  %s25_s28 = sshll.u32 %s325_s3, 4  ;;  %s230_s29 = smov [#allocation3]   ;;  %s26_s28 = int_to_ptr.hbm [resolvable:$true] %s25_s28 }
   0x4   :  { %s27_s30 = sshll.u32 %s230_s29, 4  ;;  %s231_s8 = smov 128   ;;  %s28_s30 = int_to_ptr.vmem [resolvable:$true] %s27_s30 }
   0x5   :  { %s232_s9 = smov 8  }
   0x6   :  { %33 = dma.hbm_to_vmem [thread:$0]  %s26_s28, 1024, %s28_s30, [#allocation4], %s231_s8, %s231_s8, %s232_s9  }
   0x7   :  { %228 = dma.done.wait [#allocation4], 1024  }
   0x8   :  { %229 = vsyncadd [#allocation4], 4294966272  ;;  %v233_v1 = vmov 1   ;;  %v234_v2 = vmov 3   ;;  %vm172_vm0 = vcmask 31744   ;;  %v285_v3 = vld [vmem:[%s322_s0] sm:$0xff] }
   0x9   :  { %190 = vset.pattern.permute.xlu0 %v233_v1  ;;  %192 = vset.pattern.permute.xlu1 %v234_v2  ;;  %173 = vst.msk [vmem:[%s329_s7] sm:$0xff] %vm172_vm0, %v285_v3  ;;  %v235_v4 = vmov 2   ;;  %v78_v5 = vld [vmem:[#allocation3 + $0x18] sm:$0xff]  ;;  %v77_v6 = vld [vmem:[#allocation3 + $0x10] sm:$0xff]  ;;  %v76_v7 = vld [vmem:[#allocation3 + $0x8] sm:$0xff]  ;;  %vm83_vm1 = vcmask 261120  }
   0xa   :  { %48 = vperm.xlu0 %190, %v285_v3   ;;  %68 = vperm.xlu1 %192, %v285_v3   ;;  %v75_v8 = vld [vmem:[#allocation3] sm:$0xff]  ;;  %v112_v9 = vld [vmem:[#allocation3 + $0x38] sm:$0xff]  ;;  %v111_v24 = vld [vmem:[#allocation3 + $0x30] sm:$0xff]  ;;  %vm174_vm6 = vcmask 7168  }
   0xb   :  { %99 = vmatpush.msra.mxu0 %v78_v5  ;;  %133 = vmatpush.msra.mxu1 %v112_v9  ;;  %v194_v11 = vld [vmem:[%s323_s1] ss:$0 sm:$0xff]  ;;  %v196_v14 = vld [vmem:[%s323_s1 + $0x1] ss:$0 sm:$0xff]  ;;  %v197_v15 = vld [vmem:[%s323_s1 + $0x2] ss:$0 sm:$0xff] }
   0xc   :  { %v195_v12 = vld [vmem:[%s324_s2] ss:$0 sm:$0xff]  ;;  %v110_v25 = vld [vmem:[#allocation3 + $0x28] sm:$0xff]  ;;  %v109_v26 = vld [vmem:[#allocation3 + $0x20] sm:$0xff] }
   0xd   :  { %100 = vmatpush.msra.mxu0 %v77_v6  ;;  %134 = vmatpush.msra.mxu1 %v111_v24  ;;  %v198_v27 = vld [vmem:[%s326_s4] ss:$0 sm:$0xff]  ;;  %v199_v31 = vld [vmem:[%s326_s4 + $0x1] ss:$0 sm:$0xff] }
   0xe   :  { %v200_v34 = vld [vmem:[%s327_s5] ss:$0 sm:$0xff] }
   0xf   :  { %101 = vmatpush.msra.mxu0 %v76_v7  ;;  %135 = vmatpush.msra.mxu1 %v110_v25  ;;  %v201_v38 = vld [vmem:[#allocation2] ss:$0 sm:$0xff] }
  0x11   :  { %102 = vmatpush.msra.mxu0 %v75_v8  ;;  %136 = vmatpush.msra.mxu1 %v109_v26 }
  0x12   :  { %191 = vset.pattern.permute.xlu0 %v235_v4 }
  0x13   :  { %60 = vperm.xlu0 %191, %v285_v3  }
  0x1b   :  { %193 = vset.pattern.permute.xlu0 %v234_v2 }
  0x7c   :  { %v49_v10 = vpop.permute.xlu0 %48  ;;  %v69_v16 = vpop.permute.xlu1 %68 }
  0x7d   :  { %v52_v13 = vmul.f32 %v194_v11, %v49_v10  ;;  %v72_v20 = vmul.f32 %v197_v15, %v69_v16 }
  0x7f   :  { %v57_v18 = vadd.f32 %v195_v12, %v52_v13 }
  0x85   :  { %v61_v17 = vpop.permute.xlu0 %60 }
  0x86   :  { %v64_v19 = vmul.f32 %v196_v14, %v61_v17 }
  0x88   :  { %v65_v21 = vadd.f32 %v64_v19, %v57_v18 }
  0x8a   :  { %v73_v22 = vadd.f32 %v72_v20, %v65_v21 }
  0x8c   :  { %v74_v23 = vmax.f32 %v73_v22, 0.0 }
  0x8e   :  { %181 = vmatmul.msk.f32.vlgmr.msra.gmra.mxu0 %vm83_vm1, %v74_v23 }
 0x10b   :  { %v104_v28 = vpop.f32.mrf.mxu0 }
 0x10c   :  { %v105_v29 = vadd.f32 %v198_v27, %v104_v28 }
 0x10e   :  { %v107_v30 = vmax.f32 %v105_v29, 0.0 }
 0x110   :  { %183 = vmatmul.msk.f32.vlgmr.msra.gmra.mxu1 %vm83_vm1, %v107_v30 }
 0x18d   :  { %v138_v32 = vpop.f32.mrf.mxu1 }
 0x18e   :  { %v139_v33 = vadd.f32 %v199_v31, %v138_v32 }
 0x190   :  { %v141_v35 = vmax.f32 %v139_v33, 0.0 }
 0x192   :  { %v146_v36 = vmul.f32 %v200_v34, %v141_v35 }
 0x194   :  { %v147_v37 = vsel %vm83_vm1, %v146_v36, 0.0 }
 0x195   :  { %148 = vadd.xlane.f32.xlu1 %v147_v37 }
 0x208   :  { %v149_v39 = vpop.xlane.xlu1 %148 }
 0x209   :  { %v154_v40 = vadd.f32 %v201_v38, %v149_v39 }
 0x20b   :  { %v155_v41 = vmul.f32 %v154_v40, %v154_v40 }
 0x20d   :  { %v156_v42 = vadd.f32 0.01, %v155_v41 }
 0x20f   :  { %202 = vrcp.f32 %v156_v42  ;;  %v168_v46 = vand.u32 2147483648, %v156_v42  ;;  %v166_v48 = vand.u32 2147483647, %v156_v42  ;;  %vm162_vm3 = vweird.f32 %v156_v42 }
 0x211   :  { %v169_v50 = vor.u32 1.1754944e-38, %v168_v46  ;;  %vm167_vm5 = vcmp.eq.f32.partialorder %v166_v48, 8.507059e+37 }
 0x215   :  { %v203_v43 = vpop.eup %202 }
 0x216   :  { %v158_v44 = vmul.f32 %v203_v43, %v156_v42  ;;  %vm163_vm2 = vweird.f32 %v203_v43 }
 0x217   :  { %vm164_vm4 = vmor %vm162_vm3, %vm163_vm2 }
 0x218   :  { %v159_v45 = vsub.f32 1.0, %v158_v44 }
 0x21a   :  { %v160_v47 = vmul.f32 %v203_v43, %v159_v45 }
 0x21c   :  { %v161_v49 = vadd.f32 %v203_v43, %v160_v47 }
 0x21e   :  { %v165_v51 = vsel %vm164_vm4, %v203_v43, %v161_v49 }
 0x21f   :  { %v170_v52 = vsel %vm167_vm5, %v169_v50, %v165_v51 }
 0x220   :  { %v171_v53 = vmul.f32 %v170_v52, %v285_v3 }
 0x222   :  { %175 = vst.msk [vmem:[%s329_s7] sm:$0xff] %vm174_vm6, %v171_v53 }
 0x223   :  { %180 = vsyncpa [#allocation4], 1 }

</bundles_post_ra>
